<compile_context>
chip_gen: v7x
topology: tpu7x:2x2x1
jax: 0.10.0
libtpu: 0.0.40
codegen_flags: <defaults>
</compile_context>

<pallas_src>
from functools import partial

import jax
import jax.numpy as jnp
from jax.experimental import pallas as pl
from jax.experimental.pallas import tpu as pltpu


# ----------------------------- config ---------------------------------------
B = 2           # batch
L = 8           # sequence length (cfg.L)
D = 32          # model dim (cfg.D)
HIDDEN = 4 * D  # FF hidden dim = 128 (lane-dense)


# ----------------------------- kernel ----------------------------------------
def feedforward_kernel(x_ref, w1_ref, w2_ref, o_ref, *, compute_dtype):
    # x_ref:  (B*L, D)        flattened activations
    # w1_ref: (4D, D)         W1 in PyTorch (out, in) layout — no transpose done
    # w2_ref: (D, 4D)         W2 in PyTorch (out, in) layout — no transpose done
    # o_ref:  (B*L, D)
    x = x_ref[...].astype(compute_dtype)
    w1 = w1_ref[...].astype(compute_dtype)
    w2 = w2_ref[...].astype(compute_dtype)

    # x @ W1^T : contract last dims of both operands ("NT" matmul, handled by
    # the MXU directly — no in-kernel transpose op).
    h = jax.lax.dot_general(
        x, w1, (((1,), (1,)), ((), ())),
        preferred_element_type=jnp.float32,
    )                                             # (B*L, 4D), f32 accumulation
    h = jnp.maximum(h, 0.0)                       # ReLU kept in f32 (v5e-safe)

    # relu(h) @ W2^T, same NT contraction.
    out = jax.lax.dot_general(
        h.astype(compute_dtype), w2, (((1,), (1,)), ((), ())),
        preferred_element_type=jnp.float32,
    )                                             # (B*L, D)
    o_ref[...] = out.astype(o_ref.dtype)
    # TODO(synk): dropout is identity here (inference semantics); training-mode
    # dropout would need pltpu.prng_seed + pltpu.stateful_bernoulli masking.


# ----------------------------- wrapper ----------------------------------------
@partial(jax.jit, static_argnames=("compute_dtype",))
def feedforward(x, w1, w2, compute_dtype=jnp.float32):
    """x: (B, L, D); w1: (4D, D), w2: (D, 4D) in PyTorch (out, in) layout.

    compute_dtype=jnp.bfloat16 selects the bf16-native MXU path (v6e/v7x);
    accumulation is always f32 and the returned dtype matches x.
    """
    Bx, Lx, Dx = x.shape
    n = Bx * Lx
    x2d = x.reshape(n, Dx)   # flatten batch+seq -> more MXU rows per matmul

    vmem = pltpu.MemorySpace.VMEM
    out2d = pl.pallas_call(
        partial(feedforward_kernel, compute_dtype=compute_dtype),
        out_shape=jax.ShapeDtypeStruct((n, Dx), x.dtype),
        in_specs=[
            pl.BlockSpec(memory_space=vmem),   # x2d (whole array, single shot)
            pl.BlockSpec(memory_space=vmem),   # w1  (as-is, no pre-transpose)
            pl.BlockSpec(memory_space=vmem),   # w2  (as-is, no pre-transpose)
        ],
        out_specs=pl.BlockSpec(memory_space=vmem),
    )(x2d, w1, w2)
    return out2d.reshape(Bx, Lx, Dx)


# ----------------------------- pure-JAX reference ------------------------------
def reference(x, w1, w2):
    """Float32, highest-precision reference of the PyTorch forward."""
    hp = jax.lax.Precision.HIGHEST
    h = jnp.maximum(jnp.einsum("bld,hd->blh", x, w1, precision=hp), 0.0)
    return jnp.einsum("blh,dh->bld", h, w2, precision=hp)


# ----------------------------- main -------------------------------------------
if __name__ == "__main__":
    key = jax.random.PRNGKey(0)
    kx, k1, k2 = jax.random.split(key, 3)

    x = jax.random.normal(kx, (B, L, D), jnp.float32)
    scale = 0.1
    w1 = scale * jax.random.normal(k1, (HIDDEN, D), jnp.float32)  # (4D, D)
    w2 = scale * jax.random.normal(k2, (D, HIDDEN), jnp.float32)  # (D, 4D)

    ref = reference(x, w1, w2)

    # Exact-semantics f32 path (matches the PyTorch module).
    out = jax.block_until_ready(feedforward(x, w1, w2))
    assert out.shape == (B, L, D)
    assert jnp.allclose(out, ref, atol=1e-5, rtol=1e-5), (
        float(jnp.max(jnp.abs(out - ref))))

    # bf16 MXU-operand path (v6e/v7x throughput option); f32 accumulation,
    # compared against the f32 reference with a bf16-appropriate tolerance.
    out_bf16 = jax.block_until_ready(
        feedforward(x, w1, w2, compute_dtype=jnp.bfloat16))
    assert out_bf16.shape == (B, L, D)
    assert jnp.allclose(out_bf16, ref, atol=5e-2, rtol=5e-2), (
        float(jnp.max(jnp.abs(out_bf16 - ref))))

    print("KERNEL_OK")
</pallas_src>

<mosaic_0001>
module attributes {stable_mosaic.version = 11 : i64} {
  func.func @feedforward_kernel(%arg0: memref<16x32xf32, #tpu.memory_space<vmem>>, %arg1: memref<128x32xf32, #tpu.memory_space<vmem>>, %arg2: memref<32x128xf32, #tpu.memory_space<vmem>>, %arg3: memref<16x32xf32, #tpu.memory_space<vmem>>) attributes {dimension_semantics = [], scalar_prefetch = 0 : i64, scratch_operands = 0 : i64, tpu.core_type = #tpu.core_type<tc>} {
    %c0 = arith.constant 0 : index
    %c0_0 = arith.constant 0 : index
    %0 = vector.load %arg0[%c0, %c0_0] : memref<16x32xf32, #tpu.memory_space<vmem>>, vector<16x32xf32>
    %c0_1 = arith.constant 0 : index
    %c0_2 = arith.constant 0 : index
    %1 = vector.load %arg1[%c0_1, %c0_2] : memref<128x32xf32, #tpu.memory_space<vmem>>, vector<128x32xf32>
    %c0_3 = arith.constant 0 : index
    %c0_4 = arith.constant 0 : index
    %2 = vector.load %arg2[%c0_3, %c0_4] : memref<32x128xf32, #tpu.memory_space<vmem>>, vector<32x128xf32>
    %cst = arith.constant dense<0.000000e+00> : vector<16x128xf32>
    %3 = tpu.matmul %0, %1, %cst {dimension_numbers = #tpu.dot_dimension_numbers<[1], [1], [0], [0], [0, 0, 1, 0], [], []>} : vector<16x32xf32>, vector<128x32xf32>, vector<16x128xf32> -> vector<16x128xf32>
    %cst_5 = arith.constant 0.000000e+00 : f32
    %4 = vector.broadcast %cst_5 : f32 to vector<16x128xf32>
    %5 = arith.maximumf %3, %4 : vector<16x128xf32>
    %cst_6 = arith.constant dense<0.000000e+00> : vector<16x32xf32>
    %6 = tpu.matmul %5, %2, %cst_6 {dimension_numbers = #tpu.dot_dimension_numbers<[1], [1], [0], [0], [0, 0, 1, 0], [], []>} : vector<16x128xf32>, vector<32x128xf32>, vector<16x32xf32> -> vector<16x32xf32>
    %c0_7 = arith.constant 0 : index
    %c0_8 = arith.constant 0 : index
    %7 = vector.load %arg3[%c0_7, %c0_8] : memref<16x32xf32, #tpu.memory_space<vmem>>, vector<16x32xf32>
    tpu.vector_store %arg3[%c0_7, %c0_8], %6 {strides = array<i32>} : memref<16x32xf32, #tpu.memory_space<vmem>>, vector<16x32xf32>,
    return
  }
}

</mosaic_0001>

<bundles_post_ra>
// kernel: feedforward.1
= control target key start
LH: loop header
LB: loop body
LE: loop exit
PB: predicated region body
PF: predicated region fallthrough
CT: control target
= control target key end

     0   :  { %vm37_vm0 = vcmask 261120   ;;  %s576_s0 = inlined_call_operand.vmem [shape: f32[16,32], index: 0, kind: input, shape index: {}]   ;;  %s577_s1 = inlined_call_operand.vmem [shape: f32[128,32], index: 1, kind: input, shape index: {}]   ;;  %s578_s2 = inlined_call_operand.vmem [shape: f32[32,128], index: 2, kind: input, shape index: {}]   ;;  %s579_s3 = inlined_call_operand.hbm [shape: f32[16,32], index: 3, kind: output, shape index: {}]  }
   0x1   :  { %v17_v0 = vld [vmem:[%s577_s1] sm:$0xff]  ;;  %v18_v1 = vld [vmem:[%s577_s1 + $0x8] sm:$0xff]  ;;  %v19_v2 = vld [vmem:[%s577_s1 + $0x10] sm:$0xff] }
   0x2   :  { %v350_v3 = vpack.c.bf16 %v18_v1, %v17_v0  ;;  %vm467_vm1 = vmpackc.low %vm37_vm0, %vm37_vm0  ;;  %v20_v5 = vld [vmem:[%s577_s1 + $0x18] sm:$0xff]  ;;  %v21_v7 = vld [vmem:[%s577_s1 + $0x20] sm:$0xff] }
   0x3   :  { %v356_v6 = vpack.c.bf16 %v20_v5, %v19_v2  ;;  %v15_v8 = vld [vmem:[%s576_s0] sm:$0xff]  ;;  %v22_v9 = vld [vmem:[%s577_s1 + $0x28] sm:$0xff]  ;;  %v35_v13 = vld [vmem:[%s578_s2 + $0x10] sm:$0xff] }
   0x4   :  { %352 = vmatprep.subr.msk.bf16.mxu0 %vm467_vm1, %v350_v3  ;;  %336 = vmatprep.mubr.msk.f32.mxu0 %vm37_vm0, %v15_v8  ;;  %v33_v10 = vld [vmem:[%s578_s2] sm:$0xff]  ;;  %v34_v11 = vld [vmem:[%s578_s2 + $0x8] sm:$0xff]  ;;  %v36_v14 = vld [vmem:[%s578_s2 + $0x18] sm:$0xff] }
   0x5   :  { %355 = vmatpush3.bf16.xpose.msk.msra.mxu0 %vm467_vm1, %v350_v3  ;;  %v398_v12 = vpack.c.bf16 %v34_v11, %v33_v10 }
   0x6   :  { %358 = vmatprep.subr.msk.bf16.mxu0 %vm467_vm1, %v356_v6 }
   0x7   :  { %8 = vsyncpa [#allocation3], 0  ;;  %v402_v15 = vpack.c.bf16 %v36_v14, %v35_v13  ;;  %v362_v16 = vpack.c.bf16 %v22_v9, %v21_v7  ;;  %399 = vmatprep.subr.bf16.mxu1 %v398_v12  ;;  %v23_v17 = vld [vmem:[%s577_s1 + $0x30] sm:$0xff]  ;;  %v24_v18 = vld [vmem:[%s577_s1 + $0x38] sm:$0xff] }
   0x8   :  { %401 = vmatpush3.bf16.xpose.msra.mxu1 %v398_v12  ;;  %v368_v19 = vpack.c.bf16 %v24_v18, %v23_v17  ;;  %v25_v20 = vld [vmem:[%s577_s1 + $0x40] sm:$0xff]  ;;  %v26_v21 = vld [vmem:[%s577_s1 + $0x48] sm:$0xff]  ;;  %v27_v23 = vld [vmem:[%s577_s1 + $0x50] sm:$0xff] }
   0x9   :  { %403 = vmatprep.subr.bf16.mxu1 %v402_v15  ;;  %v374_v22 = vpack.c.bf16 %v26_v21, %v25_v20  ;;  %v28_v24 = vld [vmem:[%s577_s1 + $0x58] sm:$0xff]  ;;  %v29_v26 = vld [vmem:[%s577_s1 + $0x60] sm:$0xff]  ;;  %v30_v27 = vld [vmem:[%s577_s1 + $0x68] sm:$0xff] }
   0xa   :  { %v380_v25 = vpack.c.bf16 %v28_v24, %v27_v23  ;;  %v386_v28 = vpack.c.bf16 %v30_v27, %v29_v26  ;;  %v31_v29 = vld [vmem:[%s577_s1 + $0x70] sm:$0xff]  ;;  %v32_v30 = vld [vmem:[%s577_s1 + $0x78] sm:$0xff]  ;;  %v16_v32 = vld [vmem:[%s576_s0 + $0x8] sm:$0xff]  ;;  %s433_s1 = smov [#allocation2]  }
   0xb   :  { %v392_v31 = vpack.c.bf16 %v32_v30, %v31_v29  ;;  %s251_s28 = sshll.u32 %s433_s1, 4  ;;  %s252_s28 = int_to_ptr.vmem [resolvable:$true] %s251_s28 }
   0xc   :  { %s409_s29 = scalar_lea.vmem %s252_s28, 256  ;;  %p414_p1 = scmp.lt.s32.totalorder %s252_s28, %s252_s28 }
   0xd   :  { %361 = vmatpush3.bf16.xpose.msk.msra.mxu0 %vm467_vm1, %v356_v6  ;;  %p410_p0 = scmp.ne.s32.totalorder %s252_s28, %s409_s29  ;;  %p415_p2 = scmp.lt.s32.totalorder %s409_s29, %s409_s29 }
   0xe   :  { %364 = vmatprep.subr.msk.bf16.mxu0 %vm467_vm1, %v362_v16 }
   0xf   :  { %p416_p3 = por %p415_p2, %p414_p1 }
  0x10   :  { %405 = vmatpush3.bf16.xpose.msra.mxu1 %v402_v15 }
  0x11   :  { %p417_p4 = pnand %p416_p3, %p410_p0 }
  0x15   :  { %367 = vmatpush3.bf16.xpose.msk.msra.mxu0 %vm467_vm1, %v362_v16 }
  0x16   :  { %370 = vmatprep.subr.msk.bf16.mxu0 %vm467_vm1, %v368_v19 }
  0x1d   :  { %373 = vmatpush3.bf16.xpose.msk.msra.mxu0 %vm467_vm1, %v368_v19 }
  0x1e   :  { %376 = vmatprep.subr.msk.bf16.mxu0 %vm467_vm1, %v374_v22 }
  0x25   :  { %379 = vmatpush3.bf16.xpose.msk.msra.mxu0 %vm467_vm1, %v374_v22 }
  0x26   :  { %382 = vmatprep.subr.msk.bf16.mxu0 %vm467_vm1, %v380_v25 }
  0x2d   :  { %385 = vmatpush3.bf16.xpose.msk.msra.mxu0 %vm467_vm1, %v380_v25 }
  0x2e   :  { %388 = vmatprep.subr.msk.bf16.mxu0 %vm467_vm1, %v386_v28 }
  0x35   :  { %391 = vmatpush3.bf16.xpose.msk.msra.mxu0 %vm467_vm1, %v386_v28 }
  0x36   :  { %394 = vmatprep.subr.msk.bf16.mxu0 %vm467_vm1, %v392_v31 }
  0x3d   :  { %397 = vmatpush3.bf16.xpose.msk.msra.mxu0 %vm467_vm1, %v392_v31 }
  0x44   :  { %337 = vmatmul.mubr.msk.f32.vlgmr.msra.gmra.mrb[0].mxu0 %vm37_vm0, %v16_v32 }
 0x117   :  { %v338_v33 = vpop.f32.mrb[0].mxu0 }
 0x118   :  { %v158_v34 = vpop.f32.mrb[1].mxu0  ;;  %v168_v36 = vmax.f32 %v338_v33, 0.0 }
 0x119   :  { %v167_v35 = vmax.f32 %v158_v34, 0.0 }
 0x11b   :  { %347 = vmatprep.mubr.f32.mxu1 %v167_v35 }
 0x11c   :  { %348 = vmatmul.mubr.f32.vlgmr.msra.gmra.mrb[0].mxu1 %v168_v36 }
 0x1ef   :  { %v349_v37 = vpop.f32.mrb[0].mxu1 }
 0x1f0   :  { %245 = vst.msk [vmem:[#allocation2 + $0x8] sm:$0xff] %vm37_vm0, %v349_v37  ;;  %v235_v38 = vpop.f32.mrb[1].mxu1 }
 0x1f1   :  { %244 = vst.msk [vmem:[#allocation2] sm:$0xff] %vm37_vm0, %v235_v38 }
 0x1f2   :  { %420 = shalt.err (!%p417_p4)
}
 0x1f3   :  { %s421_s4 = scalar_lea.hbm %s579_s3, 256 }
 0x1f4   :  { %p422_p5 = scmp.ne.s32.totalorder %s579_s3, %s421_s4  ;;  %p425_p6 = scmp.lt.u32.totalorder %s421_s4, %s579_s3 }
 0x1f6   :  { %p427_p7 = pnand %p425_p6, %p422_p5 }
 0x1f8   :  { %430 = shalt.err (!%p427_p7)
}
 0x1f9   :  { %s434_s9 = smov 128   ;;  %s435_s10 = smov 8  }
 0x1fa   :  { %257 = dma.vmem_to_hbm [thread:$0]  %s252_s28, 256, %s579_s3, [#allocation3], %s434_s9, %s434_s9, %s435_s10  }
 0x1fb   :  { %431 = dma.done.wait [#allocation3], 256  }
 0x1fc   :  { %432 = vsyncadd [#allocation3], 4294967040 }
 0x1fd   :  { %261 = vsyncpa [#allocation3], 1 }

</bundles_post_ra>
